<compile_context>
chip_gen: v5e
topology: v5e:2x2
jax: 0.10.0
libtpu: 0.0.40
codegen_flags: <defaults>
</compile_context>

<pallas_src>
import functools

import jax
import jax.numpy as jnp
from jax.experimental import pallas as pl
from jax.experimental.pallas import tpu as pltpu


def _inner_product_decoder_kernel(zt_ref, z_ref, adj_ref):
    # zt_ref:  (TI, C)  row-block of z^T for the current batch element
    # z_ref:   (C, TJ)  column-block of z for the current batch element
    # adj_ref: (TI, TJ) output tile
    s = jnp.dot(zt_ref[...], z_ref[...], preferred_element_type=jnp.float32)
    # sigmoid(s) == 0.5 * (tanh(0.5 * s) + 1): one EUP op/element instead of two.
    adj = 0.5 * (jnp.tanh(0.5 * s) + 1.0)
    adj_ref[...] = adj.astype(adj_ref.dtype)


def _pick_tile(n, target, align):
    """Largest divisor of n that is <= target and a multiple of `align`.

    Falls back to the full extent n (always a legal block shape)."""
    if n <= target:
        return n
    t = (target // align) * align
    while t >= align:
        if n % t == 0:
            return t
        t -= align
    return n


@functools.partial(jax.jit, static_argnames=("ti_target", "tj_target"))
def inner_product_decoder(z, *, ti_target=512, tj_target=1024):
    """adj = sigmoid(bmm(z.transpose(1,2), z)); z: (B, C, N) -> (B, N, N)."""
    B, C, N = z.shape

    # Tile budgets: TI sublane-aligned (8), TJ lane-aligned (128) for unmasked,
    # lane-dense output stores. Defaults (512 x 1024 f32 = 2 MiB/tile, 4 MiB
    # double-buffered) leave ample headroom even on v7x's 64 MiB VMEM.
    ti = _pick_tile(N, ti_target, 8)
    tj = _pick_tile(N, tj_target, 128)
    grid = (B, N // ti, N // tj)

    # One cheap HBM-side transpose so the kernel's LHS is already (N, C):
    # avoids a per-grid-step XLU transpose inside the kernel.
    z_t = jnp.transpose(z, (0, 2, 1))  # (B, N, C)

    # TODO(synk): for very large C, add a K grid axis ("arbitrary") with an f32
    # VMEM accumulator; full-C slabs are fine for the small feature dims here.

    return pl.pallas_call(
        _inner_product_decoder_kernel,
        out_shape=jax.ShapeDtypeStruct((B, N, N), z.dtype),
        grid_spec=pltpu.PrefetchScalarGridSpec(
            num_scalar_prefetch=0,
            grid=grid,
            in_specs=[
                # LHS row-block: (TI, C) slab of z^T, batch dim squeezed.
                pl.BlockSpec((None, ti, C), lambda b, i, j: (b, i, 0)),
                # RHS column-block: (C, TJ) slab of z, batch dim squeezed.
                pl.BlockSpec((None, C, tj), lambda b, i, j: (b, 0, j)),
            ],
            out_specs=pl.BlockSpec((None, ti, tj), lambda b, i, j: (b, i, j)),
        ),
        compiler_params=pltpu.CompilerParams(
            # No reduction axis: every grid point owns a disjoint output tile.
            dimension_semantics=("parallel", "parallel", "parallel"),
            # Explicit scoped-VMEM budget with headroom under v7x's 64 MiB.
            vmem_limit_bytes=48 * 1024 * 1024,
        ),
    )(z_t, z)


if __name__ == "__main__":
    key = jax.random.PRNGKey(0)

    # Small shapes consistent with forward(z) where z is (B, C, N).
    B, C, N = 2, 16, 256
    z = jax.random.normal(key, (B, C, N), dtype=jnp.float32)
    ref = jax.nn.sigmoid(jnp.einsum("bcm,bcn->bmn", z, z))

    # 1) Default tile budgets (single tile for this small N).
    adj = inner_product_decoder(z)
    jax.block_until_ready(adj)
    assert adj.shape == (B, N, N)
    assert jnp.allclose(adj, ref, atol=1e-5, rtol=1e-5)

    # 2) Force smaller tiles to exercise the (B, N//TI, N//TJ) tiled grid path.
    adj_tiled = inner_product_decoder(z, ti_target=64, tj_target=128)
    jax.block_until_ready(adj_tiled)
    assert jnp.allclose(adj_tiled, ref, atol=1e-5, rtol=1e-5)

    print("KERNEL_OK")
</pallas_src>

<mosaic_0001>
module attributes {stable_mosaic.version = 11 : i64} {
  func.func @_inner_product_decoder_kernel(%arg0: i32, %arg1: i32, %arg2: i32, %arg3: memref<1x256x16xf32, #tpu.memory_space<vmem>>, %arg4: memref<1x16x256xf32, #tpu.memory_space<vmem>>, %arg5: memref<1x256x256xf32, #tpu.memory_space<vmem>>) attributes {dimension_semantics = [#tpu.dimension_semantics<parallel>, #tpu.dimension_semantics<parallel>, #tpu.dimension_semantics<parallel>], iteration_bounds = array<i64: 2, 1, 1>, scalar_prefetch = 0 : i64, scratch_operands = 0 : i64, tpu.core_type = #tpu.core_type<tc>, window_params = [{transform_indices = @transform_0, window_bounds = array<i64: 1, 256, 16>}, {transform_indices = @transform_1, window_bounds = array<i64: 1, 16, 256>}, {transform_indices = @transform_2, window_bounds = array<i64: 1, 256, 256>}]} {
    %c0 = arith.constant 0 : index
    %c0_0 = arith.constant 0 : index
    %c0_1 = arith.constant 0 : index
    %0 = vector.load %arg3[%c0, %c0_0, %c0_1] : memref<1x256x16xf32, #tpu.memory_space<vmem>>, vector<1x256x16xf32>
    %1 = vector.shape_cast %0 : vector<1x256x16xf32> to vector<256x16xf32>
    %c0_2 = arith.constant 0 : index
    %c0_3 = arith.constant 0 : index
    %c0_4 = arith.constant 0 : index
    %2 = vector.load %arg4[%c0_2, %c0_3, %c0_4] : memref<1x16x256xf32, #tpu.memory_space<vmem>>, vector<1x16x256xf32>
    %3 = vector.shape_cast %2 : vector<1x16x256xf32> to vector<16x256xf32>
    %cst = arith.constant dense<0.000000e+00> : vector<256x256xf32>
    %4 = tpu.matmul %1, %3, %cst {dimension_numbers = #tpu.dot_dimension_numbers<[1], [0], [0], [1], [0, 0, 1, 1], [], []>} : vector<256x16xf32>, vector<16x256xf32>, vector<256x256xf32> -> vector<256x256xf32>
    %cst_5 = arith.constant 5.000000e-01 : f32
    %5 = vector.broadcast %cst_5 : f32 to vector<256x256xf32>
    %6 = arith.mulf %5, %4 : vector<256x256xf32>
    %7 = math.tanh %6 : vector<256x256xf32>
    %cst_6 = arith.constant 1.000000e+00 : f32
    %8 = vector.broadcast %cst_6 : f32 to vector<256x256xf32>
    %9 = arith.addf %7, %8 : vector<256x256xf32>
    %cst_7 = arith.constant 5.000000e-01 : f32
    %10 = vector.broadcast %cst_7 : f32 to vector<256x256xf32>
    %11 = arith.mulf %10, %9 : vector<256x256xf32>
    %c0_8 = arith.constant 0 : index
    %c0_9 = arith.constant 0 : index
    %c0_10 = arith.constant 0 : index
    %12 = vector.load %arg5[%c0_8, %c0_9, %c0_10] : memref<1x256x256xf32, #tpu.memory_space<vmem>>, vector<1x256x256xf32>
    %13 = vector.shape_cast %12 : vector<1x256x256xf32> to vector<256x256xf32>
    %14 = vector.shape_cast %11 : vector<256x256xf32> to vector<1x256x256xf32>
    tpu.vector_store %arg5[%c0_8, %c0_9, %c0_10], %14 {strides = array<i32>} : memref<1x256x256xf32, #tpu.memory_space<vmem>>, vector<1x256x256xf32>,
    return
  }
  func.func @transform_0(%arg0: i32, %arg1: i32, %arg2: i32) -> (i32, i32, i32) {
    %c0_i32 = arith.constant 0 : i32
    %c0_i32_0 = arith.constant 0 : i32
    return %arg0, %arg1, %c0_i32 : i32, i32, i32
  }
  func.func @transform_1(%arg0: i32, %arg1: i32, %arg2: i32) -> (i32, i32, i32) {
    %c0_i32 = arith.constant 0 : i32
    %c0_i32_0 = arith.constant 0 : i32
    return %arg0, %c0_i32, %arg2 : i32, i32, i32
  }
  func.func @transform_2(%arg0: i32, %arg1: i32, %arg2: i32) -> (i32, i32, i32) {
    %c0_i32 = arith.constant 0 : i32
    return %arg0, %arg1, %arg2 : i32, i32, i32
  }
}

</mosaic_0001>

<bundles_post_ra>
// kernel: inner_product_decoder.1
= control target key start
LH: loop header
LB: loop body
LE: loop exit
PB: predicated region body
PF: predicated region fallthrough
CT: control target
= control target key end

     0   :  { %7 = vsyncpa [#allocation3], 0  ;;  %s1658_s0 = inlined_call_operand.vmem [shape: f32[2,256,16], index: 0, kind: input, shape index: {}]   ;;  %s1659_s1 = inlined_call_operand.vmem [shape: f32[2,16,256], index: 1, kind: input, shape index: {}]   ;;  %s1660_s2 = inlined_call_operand.hbm [shape: f32[2,256,256], index: 2, kind: output, shape index: {}]  }
   0x1   :  { %9 = vsyncpa [#allocation3 + $0x1], 0  ;;  %s1389_s9 = smov 0   ;;  %s1391_s10 = smov 0  }
   0x2   :  { %s1393_s11 = smov 0   ;;  %s1395_s12 = smov 0  }
   0x3   :  { %s1397_s13 = smov 0   ;;  %s1399_s14 = smov 0  }
   0x4 LB: > { %s1021_s15 = sadd.s32 4294967295, %s1370_s14   ;;  %s1022_s16 = sadd.s32 4294967294, %s1370_s14   ;;  %s1370_s14 = sphi %s1399_s14, %s15_s14   ;;  %s1366_s13 = sphi %s1397_s13, %s1667_s13   ;;  %s1362_s12 = sphi %s1395_s12, %s1666_s12   ;;  %s1358_s11 = sphi %s1393_s11, %s1665_s11   ;;  %s1354_s10 = sphi %s1391_s10, %s1664_s10   ;;  %s1350_s9 = sphi %s1389_s9, %s1663_s9  }
   0x5   : > { %s34_s17 = sadd.s32 1, %s1366_s13  ;;  %s101_s18 = sadd.s32 1, %s1358_s11 }
   0x6   : > { %p36_p0 = scmp.ge.s32.totalorder %s34_s17, 2  ;;  %p111_p1 = scmp.ne.s32.totalorder %s1358_s11, %s1354_s10 }
   0x7   : > { %p112_p2 = scmp.eq.s32.totalorder %s1021_s15, 1  ;;  %p117_p3 = scmp.ne.s32.totalorder %s1354_s10, %s1350_s9 }
   0x8   : > { %s1669_s17 = smov (%p36_p0, %s34_s17), 0  ;;  %p118_p5 = scmp.eq.s32.totalorder %s1022_s16, 1 }
   0x9   : > { %p1429_p4 = por %p112_p2, %p111_p1  ;;  %s94_s20 = ssub.s32 %s1366_s13, %s1669_s17 }
   0xa   : > { %p1025_p6 = scmp.ge.s32.totalorder %s1370_s14, 1  ;;  %p99_p7 = scmp.eq.s32.totalorder %s94_s20, 0 }
   0xb   : > { %p1436_p8 = por %p118_p5, %p117_p3  ;;  %p162_p9 = scmp.lt.s32.totalorder %s1370_s14, 3 }
   0xc   : > { %s1442_s22 = scalar_select %p99_p7, %s1358_s11, %s101_s18  }
   0xd   : > { %p163_p10 = pnand %p1025_p6, %p162_p9 }
   0xe   : > { %p198_p11 = scmp.lt.s32.totalorder (!%p163_p10), %s1362_s12, 1  ;;  %s194_s4 = sand.u32 (!%p163_p10), 1, %s1354_s10  }
   0xf   : > { %166 = sbr.rel (%p163_p10) target bundleno = 298 (0x12a), region = 28  ;;  %s1026_s5 = sshll.u32 (!%p163_p10), %s194_s4, 9 }
  0x10   : > { %s1553_s6 = scalar_lea.vmem (!%p163_p10), [#allocation2], %s1026_s5  ;;  %s1102_s7 = sshll.u32 (!%p163_p10), %s1362_s12, 9 }
  0x11   : > { %s915_s16 = scalar_lea.hbm (!%p163_p10), %s1660_s2, %s1102_s7  ;;  %s899_s20 = scalar_lea.sflag (!%p163_p10), [#allocation3], %s194_s4 }
  0x12   : > { %s918_s18 = sshll.u32 (!%p163_p10), %s915_s16, 4  ;;  %s1312_s27 = scalar_lea.hbm (!%p163_p10), %s1660_s2, 1024  ;;  %s919_s18 = int_to_ptr.hbm [resolvable:$true] %s918_s18 }
  0x14   : > { %s199_s23 = scalar_select %p198_p11, %s1362_s12, 1  ;;  %vm255_vm0 = vcmask 130048  }
  0x15   : > { %s916_s12 = sshll.u32 %s1553_s6, 4  ;;  %s917_s12 = int_to_ptr.vmem [resolvable:$true] %s916_s12 }
  0x16   : > { %s1100_s24 = sshll.u32 %s199_s23, 8  ;;  %s1101_s25 = sshll.u32 %s199_s23, 5 }
  0x17   : > { %s1449_s28 = scalar_lea.vmem %s1658_s0, %s1100_s24  ;;  %s215_s3 = scalar_lea.vmem %s1659_s1, %s1101_s25 }
  0x18   : > { %v253_v0 = vld [vmem:[%s215_s3 + $0x10] sm:$0xff]  ;;  %v254_v1 = vld [vmem:[%s215_s3 + $0x18] sm:$0xff]  ;;  %v251_v2 = vld [vmem:[%s215_s3] sm:$0xff]  ;;  %s1306_s23 = sshra.s32 %s919_s18, 4  ;;  %s1307_s23 = int_to_ptr.hbm [resolvable:$true] %s1306_s23 }
  0x19   : > { %1103 = vmatpush.msra.mxu2 %v253_v0  ;;  %1105 = vmatpush.msra.mxu3 %v254_v1  ;;  %v252_v3 = vld [vmem:[%s215_s3 + $0x8] sm:$0xff]  ;;  %v235_v4 = vld [vmem:[%s1449_s28 + $0x80] sm:$0xff]  ;;  %v237_v8 = vld [vmem:[%s1449_s28 + $0x90] sm:$0xff]  ;;  %s1308_s24 = scalar_lea.hbm %s1307_s23, 512  ;;  %p1313_p1 = scmp.lt.s32.totalorder %s1307_s23, %s1660_s2 }
  0x1a   : > { %366 = vmatpush.msra.mxu0 %v253_v0  ;;  %479 = vmatpush.msra.mxu1 %v254_v1  ;;  %v219_v5 = vld [vmem:[%s1449_s28] sm:$0xff]  ;;  %v236_v6 = vld [vmem:[%s1449_s28 + $0x88] sm:$0xff]  ;;  %v221_v9 = vld [vmem:[%s1449_s28 + $0x10] sm:$0xff]  ;;  %p1309_p12 = scmp.ne.s32.totalorder %s1307_s23, %s1308_s24  ;;  %p1314_p2 = scmp.lt.s32.totalorder %s1312_s27, %s1308_s24 }
  0x1b   : > { %1104 = vmatpush.msra.mxu2 %v251_v2  ;;  %1106 = vmatpush.msra.mxu3 %v252_v3  ;;  %v220_v7 = vld [vmem:[%s1449_s28 + $0x8] sm:$0xff]  ;;  %v238_v10 = vld [vmem:[%s1449_s28 + $0x98] sm:$0xff]  ;;  %v239_v12 = vld [vmem:[%s1449_s28 + $0xa0] sm:$0xff] }
  0x1c   : > { %1047 = vmatmul.msk.f32.vlgmr.msra.gmra.mxu2 %vm255_vm0, %v235_v4  ;;  %1079 = vmatmul.msk.f32.vlgmr.msra.gmra.mxu3 %vm255_vm0, %v235_v4  ;;  %v222_v11 = vld [vmem:[%s1449_s28 + $0x18] sm:$0xff]  ;;  %v223_v13 = vld [vmem:[%s1449_s28 + $0x20] sm:$0xff]  ;;  %v240_v14 = vld [vmem:[%s1449_s28 + $0xa8] sm:$0xff]  ;;  %p1310_p13 = pnand %p1309_p12, %p1429_p4  ;;  %p1315_p3 = por %p1314_p2, %p1313_p1 }
  0x1d   : > { %367 = vmatpush.msra.mxu0 %v251_v2  ;;  %480 = vmatpush.msra.mxu1 %v252_v3  ;;  %v224_v15 = vld [vmem:[%s1449_s28 + $0x28] sm:$0xff]  ;;  %v241_v16 = vld [vmem:[%s1449_s28 + $0xb0] sm:$0xff]  ;;  %v242_v18 = vld [vmem:[%s1449_s28 + $0xb8] sm:$0xff] }
  0x1e   : > { %1031 = vmatmul.msk.f32.vlgmr.msra.gmra.mxu0 %vm255_vm0, %v219_v5  ;;  %1063 = vmatmul.msk.f32.vlgmr.msra.gmra.mxu1 %vm255_vm0, %v219_v5  ;;  %v225_v17 = vld [vmem:[%s1449_s28 + $0x30] sm:$0xff]  ;;  %v226_v19 = vld [vmem:[%s1449_s28 + $0x38] sm:$0xff]  ;;  %v243_v20 = vld [vmem:[%s1449_s28 + $0xc0] sm:$0xff]  ;;  %p1311_p0 = pneg %p1310_p13 }
  0x1f   : > { %v227_v21 = vld [vmem:[%s1449_s28 + $0x40] sm:$0xff]  ;;  %v244_v22 = vld [vmem:[%s1449_s28 + $0xc8] sm:$0xff]  ;;  %v245_v24 = vld [vmem:[%s1449_s28 + $0xd0] sm:$0xff] }
  0x20   : > { %v228_v23 = vld [vmem:[%s1449_s28 + $0x48] sm:$0xff]  ;;  %v229_v25 = vld [vmem:[%s1449_s28 + $0x50] sm:$0xff]  ;;  %v246_v26 = vld [vmem:[%s1449_s28 + $0xd8] sm:$0xff]  ;;  %p1316_p5 = pnand %p1315_p3, %p1311_p0 }
  0x21   : > { %v230_v27 = vld [vmem:[%s1449_s28 + $0x58] sm:$0xff]  ;;  %v247_v28 = vld [vmem:[%s1449_s28 + $0xe0] sm:$0xff]  ;;  %v248_v30 = vld [vmem:[%s1449_s28 + $0xe8] sm:$0xff] }
  0x22   : > { %v231_v29 = vld [vmem:[%s1449_s28 + $0x60] sm:$0xff]  ;;  %v232_v31 = vld [vmem:[%s1449_s28 + $0x68] sm:$0xff]  ;;  %v249_v32 = vld [vmem:[%s1449_s28 + $0xf0] sm:$0xff] }
  0x23   : > { %v233_v33 = vld [vmem:[%s1449_s28 + $0x70] sm:$0xff]  ;;  %v250_v34 = vld [vmem:[%s1449_s28 + $0xf8] sm:$0xff] }
  0x24   : > { %1048 = vmatmul.msk.f32.gmra.mxu2 %vm255_vm0, %v236_v6  ;;  %1080 = vmatmul.msk.f32.gmra.mxu3 %vm255_vm0, %v236_v6  ;;  %v234_v35 = vld [vmem:[%s1449_s28 + $0x78] sm:$0xff] }
  0x26   : > { %1032 = vmatmul.msk.f32.gmra.mxu0 %vm255_vm0, %v220_v7  ;;  %1064 = vmatmul.msk.f32.gmra.mxu1 %vm255_vm0, %v220_v7 }
  0x2c   : > { %1049 = vmatmul.msk.f32.gmra.mxu2 %vm255_vm0, %v237_v8  ;;  %1081 = vmatmul.msk.f32.gmra.mxu3 %vm255_vm0, %v237_v8 }
  0x2e   : > { %1033 = vmatmul.msk.f32.gmra.mxu0 %vm255_vm0, %v221_v9  ;;  %1065 = vmatmul.msk.f32.gmra.mxu1 %vm255_vm0, %v221_v9 }
  0x34   : > { %1050 = vmatmul.msk.f32.gmra.mxu2 %vm255_vm0, %v238_v10  ;;  %1082 = vmatmul.msk.f32.gmra.mxu3 %vm255_vm0, %v238_v10 }
  0x36   : > { %1034 = vmatmul.msk.f32.gmra.mxu0 %vm255_vm0, %v222_v11  ;;  %1066 = vmatmul.msk.f32.gmra.mxu1 %vm255_vm0, %v222_v11 }
  0x3c   : > { %1051 = vmatmul.msk.f32.gmra.mxu2 %vm255_vm0, %v239_v12  ;;  %1083 = vmatmul.msk.f32.gmra.mxu3 %vm255_vm0, %v239_v12 }
  0x3e   : > { %1035 = vmatmul.msk.f32.gmra.mxu0 %vm255_vm0, %v223_v13  ;;  %1067 = vmatmul.msk.f32.gmra.mxu1 %vm255_vm0, %v223_v13 }
  0x44   : > { %1052 = vmatmul.msk.f32.gmra.mxu2 %vm255_vm0, %v240_v14  ;;  %1084 = vmatmul.msk.f32.gmra.mxu3 %vm255_vm0, %v240_v14 }
  0x46   : > { %1036 = vmatmul.msk.f32.gmra.mxu0 %vm255_vm0, %v224_v15  ;;  %1068 = vmatmul.msk.f32.gmra.mxu1 %vm255_vm0, %v224_v15 }
  0x4c   : > { %1053 = vmatmul.msk.f32.gmra.mxu2 %vm255_vm0, %v241_v16  ;;  %1085 = vmatmul.msk.f32.gmra.mxu3 %vm255_vm0, %v241_v16 }
  0x4e   : > { %1037 = vmatmul.msk.f32.gmra.mxu0 %vm255_vm0, %v225_v17  ;;  %1069 = vmatmul.msk.f32.gmra.mxu1 %vm255_vm0, %v225_v17 }
  0x54   : > { %1054 = vmatmul.msk.f32.gmra.mxu2 %vm255_vm0, %v242_v18  ;;  %1086 = vmatmul.msk.f32.gmra.mxu3 %vm255_vm0, %v242_v18 }
  0x56   : > { %1038 = vmatmul.msk.f32.gmra.mxu0 %vm255_vm0, %v226_v19  ;;  %1070 = vmatmul.msk.f32.gmra.mxu1 %vm255_vm0, %v226_v19 }
  0x5c   : > { %1055 = vmatmul.msk.f32.gmra.mxu2 %vm255_vm0, %v243_v20  ;;  %1087 = vmatmul.msk.f32.gmra.mxu3 %vm255_vm0, %v243_v20 }
  0x5e   : > { %1039 = vmatmul.msk.f32.gmra.mxu0 %vm255_vm0, %v227_v21  ;;  %1071 = vmatmul.msk.f32.gmra.mxu1 %vm255_vm0, %v227_v21 }
  0x64   : > { %1056 = vmatmul.msk.f32.gmra.mxu2 %vm255_vm0, %v244_v22  ;;  %1088 = vmatmul.msk.f32.gmra.mxu3 %vm255_vm0, %v244_v22 }
  0x66   : > { %1040 = vmatmul.msk.f32.gmra.mxu0 %vm255_vm0, %v228_v23  ;;  %1072 = vmatmul.msk.f32.gmra.mxu1 %vm255_vm0, %v228_v23 }
  0x6c   : > { %1057 = vmatmul.msk.f32.gmra.mxu2 %vm255_vm0, %v245_v24  ;;  %1089 = vmatmul.msk.f32.gmra.mxu3 %vm255_vm0, %v245_v24 }
  0x6e   : > { %1041 = vmatmul.msk.f32.gmra.mxu0 %vm255_vm0, %v229_v25  ;;  %1073 = vmatmul.msk.f32.gmra.mxu1 %vm255_vm0, %v229_v25 }
  0x74   : > { %1058 = vmatmul.msk.f32.gmra.mxu2 %vm255_vm0, %v246_v26  ;;  %1090 = vmatmul.msk.f32.gmra.mxu3 %vm255_vm0, %v246_v26 }
  0x76   : > { %1042 = vmatmul.msk.f32.gmra.mxu0 %vm255_vm0, %v230_v27  ;;  %1074 = vmatmul.msk.f32.gmra.mxu1 %vm255_vm0, %v230_v27 }
  0x7c   : > { %1059 = vmatmul.msk.f32.gmra.mxu2 %vm255_vm0, %v247_v28  ;;  %1091 = vmatmul.msk.f32.gmra.mxu3 %vm255_vm0, %v247_v28 }
  0x7e   : > { %1043 = vmatmul.msk.f32.gmra.mxu0 %vm255_vm0, %v231_v29  ;;  %1075 = vmatmul.msk.f32.gmra.mxu1 %vm255_vm0, %v231_v29 }
  0x84   : > { %1060 = vmatmul.msk.f32.gmra.mxu2 %vm255_vm0, %v248_v30  ;;  %1092 = vmatmul.msk.f32.gmra.mxu3 %vm255_vm0, %v248_v30 }
  0x86   : > { %1044 = vmatmul.msk.f32.gmra.mxu0 %vm255_vm0, %v232_v31  ;;  %1076 = vmatmul.msk.f32.gmra.mxu1 %vm255_vm0, %v232_v31 }
  0x8c   : > { %1061 = vmatmul.msk.f32.gmra.mxu2 %vm255_vm0, %v249_v32  ;;  %1093 = vmatmul.msk.f32.gmra.mxu3 %vm255_vm0, %v249_v32 }
  0x8e   : > { %1045 = vmatmul.msk.f32.gmra.mxu0 %vm255_vm0, %v233_v33  ;;  %1077 = vmatmul.msk.f32.gmra.mxu1 %vm255_vm0, %v233_v33 }
  0x94   : > { %1062 = vmatmul.msk.f32.gmra.mxu2 %vm255_vm0, %v250_v34  ;;  %1094 = vmatmul.msk.f32.gmra.mxu3 %vm255_vm0, %v250_v34 }
  0x96   : > { %1046 = vmatmul.msk.f32.gmra.mxu0 %vm255_vm0, %v234_v35  ;;  %1078 = vmatmul.msk.f32.gmra.mxu1 %vm255_vm0, %v234_v35 }
  0x9b   : > { %v369_v36 = vpop.f32.mrf.mxu0  ;;  %v482_v37 = vpop.f32.mrf.mxu1 }
  0x9c   : > { %v578_v38 = vmul.f32 0.5, %v369_v36  ;;  %v579_v39 = vmul.f32 0.5, %v482_v37 }
  0x9e   : > { %1164 = vtanh.f32 %v578_v38 }
  0x9f   : > { %v417_v40 = vpop.f32.mrf.mxu2  ;;  %1166 = vtanh.f32 %v579_v39  ;;  %v530_v41 = vpop.f32.mrf.mxu3 }
  0xa0   : > { %v610_v42 = vmul.f32 0.5, %v417_v40  ;;  %v611_v43 = vmul.f32 0.5, %v530_v41 }
  0xa2   : > { %1168 = vtanh.f32 %v610_v42 }
  0xa3   : > { %1170 = vtanh.f32 %v611_v43  ;;  %v372_v44 = vpop.f32.mrf.mxu0  ;;  %v485_v45 = vpop.f32.mrf.mxu1 }
  0xa4   : > { %v1165_v46 = vpop.eup %1164  ;;  %v580_v47 = vmul.f32 0.5, %v372_v44  ;;  %v581_v48 = vmul.f32 0.5, %v485_v45 }
  0xa5   : > { %v1167_v49 = vpop.eup %1166  ;;  %v706_v50 = vadd.f32 1.0, %v1165_v46 }
  0xa6   : > { %v707_v51 = vadd.f32 1.0, %v1167_v49  ;;  %1172 = vtanh.f32 %v580_v47 }
  0xa7   : > { %v770_v52 = vmul.f32 0.5, %v706_v50  ;;  %v420_v53 = vpop.f32.mrf.mxu2  ;;  %1174 = vtanh.f32 %v581_v48  ;;  %v533_v54 = vpop.f32.mrf.mxu3 }
  0xa8   : > { %v1169_v55 = vpop.eup %1168  ;;  %v771_v56 = vmul.f32 0.5, %v707_v51  ;;  %v612_v57 = vmul.f32 0.5, %v420_v53  ;;  %v613_v58 = vmul.f32 0.5, %v533_v54 }
  0xa9   : > { %v1171_v59 = vpop.eup %1170  ;;  %834 = vst [vmem:[%s1553_s6] sm:$0xff] %v770_v52  ;;  %v738_v60 = vadd.f32 1.0, %v1169_v55 }
  0xaa   : > { %835 = vst [vmem:[%s1553_s6 + $0x8] sm:$0xff] %v771_v56  ;;  %v739_v61 = vadd.f32 1.0, %v1171_v59  ;;  %1176 = vtanh.f32 %v612_v57 }
  0xab   : > { %v802_v62 = vmul.f32 0.5, %v738_v60  ;;  %1178 = vtanh.f32 %v613_v58  ;;  %v375_v63 = vpop.f32.mrf.mxu0  ;;  %v488_v0 = vpop.f32.mrf.mxu1 }
  0xac   : > { %v1173_v1 = vpop.eup %1172  ;;  %v803_v2 = vmul.f32 0.5, %v739_v61  ;;  %v582_v3 = vmul.f32 0.5, %v375_v63  ;;  %v583_v4 = vmul.f32 0.5, %v488_v0 }
  0xad   : > { %v1175_v5 = vpop.eup %1174  ;;  %866 = vst [vmem:[%s1553_s6 + $0x100] sm:$0xff] %v802_v62  ;;  %v708_v6 = vadd.f32 1.0, %v1173_v1 }
  0xae   : > { %867 = vst [vmem:[%s1553_s6 + $0x108] sm:$0xff] %v803_v2  ;;  %v709_v7 = vadd.f32 1.0, %v1175_v5  ;;  %1180 = vtanh.f32 %v582_v3 }
  0xaf   : > { %v772_v8 = vmul.f32 0.5, %v708_v6  ;;  %v423_v9 = vpop.f32.mrf.mxu2  ;;  %1182 = vtanh.f32 %v583_v4  ;;  %v536_v10 = vpop.f32.mrf.mxu3 }
  0xb0   : > { %v1177_v11 = vpop.eup %1176  ;;  %v773_v12 = vmul.f32 0.5, %v709_v7  ;;  %v614_v13 = vmul.f32 0.5, %v423_v9  ;;  %v615_v14 = vmul.f32 0.5, %v536_v10 }
  0xb1   : > { %v1179_v15 = vpop.eup %1178  ;;  %836 = vst [vmem:[%s1553_s6 + $0x10] sm:$0xff] %v772_v8  ;;  %v740_v16 = vadd.f32 1.0, %v1177_v11 }
  0xb2   : > { %837 = vst [vmem:[%s1553_s6 + $0x18] sm:$0xff] %v773_v12  ;;  %v741_v17 = vadd.f32 1.0, %v1179_v15  ;;  %1184 = vtanh.f32 %v614_v13 }
  0xb3   : > { %v804_v18 = vmul.f32 0.5, %v740_v16  ;;  %1186 = vtanh.f32 %v615_v14  ;;  %v378_v19 = vpop.f32.mrf.mxu0  ;;  %v491_v20 = vpop.f32.mrf.mxu1 }
  0xb4   : > { %v1181_v21 = vpop.eup %1180  ;;  %v805_v22 = vmul.f32 0.5, %v741_v17  ;;  %v584_v23 = vmul.f32 0.5, %v378_v19  ;;  %v585_v24 = vmul.f32 0.5, %v491_v20 }
  0xb5   : > { %v1183_v25 = vpop.eup %1182  ;;  %868 = vst [vmem:[%s1553_s6 + $0x110] sm:$0xff] %v804_v18  ;;  %v710_v26 = vadd.f32 1.0, %v1181_v21 }
  0xb6   : > { %869 = vst [vmem:[%s1553_s6 + $0x118] sm:$0xff] %v805_v22  ;;  %v711_v27 = vadd.f32 1.0, %v1183_v25  ;;  %1188 = vtanh.f32 %v584_v23 }
  0xb7   : > { %v774_v28 = vmul.f32 0.5, %v710_v26  ;;  %v426_v29 = vpop.f32.mrf.mxu2  ;;  %1190 = vtanh.f32 %v585_v24  ;;  %v539_v30 = vpop.f32.mrf.mxu3 }
  0xb8   : > { %v1185_v31 = vpop.eup %1184  ;;  %v775_v32 = vmul.f32 0.5, %v711_v27  ;;  %v616_v33 = vmul.f32 0.5, %v426_v29  ;;  %v617_v34 = vmul.f32 0.5, %v539_v30 }
  0xb9   : > { %v1187_v35 = vpop.eup %1186  ;;  %838 = vst [vmem:[%s1553_s6 + $0x20] sm:$0xff] %v774_v28  ;;  %v742_v36 = vadd.f32 1.0, %v1185_v31 }
  0xba   : > { %839 = vst [vmem:[%s1553_s6 + $0x28] sm:$0xff] %v775_v32  ;;  %v743_v37 = vadd.f32 1.0, %v1187_v35  ;;  %1192 = vtanh.f32 %v616_v33 }
  0xbb   : > { %v806_v38 = vmul.f32 0.5, %v742_v36  ;;  %1194 = vtanh.f32 %v617_v34  ;;  %v381_v39 = vpop.f32.mrf.mxu0  ;;  %v494_v40 = vpop.f32.mrf.mxu1 }
  0xbc   : > { %v1189_v41 = vpop.eup %1188  ;;  %v807_v42 = vmul.f32 0.5, %v743_v37  ;;  %v586_v43 = vmul.f32 0.5, %v381_v39  ;;  %v587_v44 = vmul.f32 0.5, %v494_v40 }
  0xbd   : > { %v1191_v45 = vpop.eup %1190  ;;  %870 = vst [vmem:[%s1553_s6 + $0x120] sm:$0xff] %v806_v38  ;;  %v712_v46 = vadd.f32 1.0, %v1189_v41 }
  0xbe   : > { %871 = vst [vmem:[%s1553_s6 + $0x128] sm:$0xff] %v807_v42  ;;  %v713_v47 = vadd.f32 1.0, %v1191_v45  ;;  %1196 = vtanh.f32 %v586_v43 }
  0xbf   : > { %v776_v48 = vmul.f32 0.5, %v712_v46  ;;  %v429_v49 = vpop.f32.mrf.mxu2  ;;  %1198 = vtanh.f32 %v587_v44  ;;  %v542_v50 = vpop.f32.mrf.mxu3 }
  0xc0   : > { %v1193_v51 = vpop.eup %1192  ;;  %v777_v52 = vmul.f32 0.5, %v713_v47  ;;  %v618_v53 = vmul.f32 0.5, %v429_v49  ;;  %v619_v54 = vmul.f32 0.5, %v542_v50 }
  0xc1   : > { %v1195_v55 = vpop.eup %1194  ;;  %840 = vst [vmem:[%s1553_s6 + $0x30] sm:$0xff] %v776_v48  ;;  %v744_v56 = vadd.f32 1.0, %v1193_v51 }
  0xc2   : > { %841 = vst [vmem:[%s1553_s6 + $0x38] sm:$0xff] %v777_v52  ;;  %v745_v57 = vadd.f32 1.0, %v1195_v55  ;;  %1200 = vtanh.f32 %v618_v53 }
  0xc3   : > { %v808_v58 = vmul.f32 0.5, %v744_v56  ;;  %1202 = vtanh.f32 %v619_v54  ;;  %v384_v59 = vpop.f32.mrf.mxu0  ;;  %v497_v60 = vpop.f32.mrf.mxu1 }
  0xc4   : > { %v1197_v61 = vpop.eup %1196  ;;  %v809_v62 = vmul.f32 0.5, %v745_v57  ;;  %v588_v63 = vmul.f32 0.5, %v384_v59  ;;  %v589_v0 = vmul.f32 0.5, %v497_v60 }
  0xc5   : > { %v1199_v1 = vpop.eup %1198  ;;  %872 = vst [vmem:[%s1553_s6 + $0x130] sm:$0xff] %v808_v58  ;;  %v714_v2 = vadd.f32 1.0, %v1197_v61 }
  0xc6   : > { %873 = vst [vmem:[%s1553_s6 + $0x138] sm:$0xff] %v809_v62  ;;  %v715_v3 = vadd.f32 1.0, %v1199_v1  ;;  %1204 = vtanh.f32 %v588_v63 }
  0xc7   : > { %v778_v4 = vmul.f32 0.5, %v714_v2  ;;  %v432_v5 = vpop.f32.mrf.mxu2  ;;  %1206 = vtanh.f32 %v589_v0  ;;  %v545_v6 = vpop.f32.mrf.mxu3 }
  0xc8   : > { %v1201_v7 = vpop.eup %1200  ;;  %v779_v8 = vmul.f32 0.5, %v715_v3  ;;  %v620_v9 = vmul.f32 0.5, %v432_v5  ;;  %v621_v10 = vmul.f32 0.5, %v545_v6 }
  0xc9   : > { %v1203_v11 = vpop.eup %1202  ;;  %842 = vst [vmem:[%s1553_s6 + $0x40] sm:$0xff] %v778_v4  ;;  %v746_v12 = vadd.f32 1.0, %v1201_v7 }
  0xca   : > { %843 = vst [vmem:[%s1553_s6 + $0x48] sm:$0xff] %v779_v8  ;;  %v747_v13 = vadd.f32 1.0, %v1203_v11  ;;  %1208 = vtanh.f32 %v620_v9 }
  0xcb   : > { %v810_v14 = vmul.f32 0.5, %v746_v12  ;;  %1210 = vtanh.f32 %v621_v10  ;;  %v387_v15 = vpop.f32.mrf.mxu0  ;;  %v500_v16 = vpop.f32.mrf.mxu1 }
  0xcc   : > { %v1205_v17 = vpop.eup %1204  ;;  %v811_v18 = vmul.f32 0.5, %v747_v13  ;;  %v590_v19 = vmul.f32 0.5, %v387_v15  ;;  %v591_v20 = vmul.f32 0.5, %v500_v16 }
  0xcd   : > { %v1207_v21 = vpop.eup %1206  ;;  %874 = vst [vmem:[%s1553_s6 + $0x140] sm:$0xff] %v810_v14  ;;  %v716_v22 = vadd.f32 1.0, %v1205_v17 }
  0xce   : > { %875 = vst [vmem:[%s1553_s6 + $0x148] sm:$0xff] %v811_v18  ;;  %v717_v23 = vadd.f32 1.0, %v1207_v21  ;;  %1212 = vtanh.f32 %v590_v19 }
  0xcf   : > { %v780_v24 = vmul.f32 0.5, %v716_v22  ;;  %v435_v25 = vpop.f32.mrf.mxu2  ;;  %1214 = vtanh.f32 %v591_v20  ;;  %v548_v26 = vpop.f32.mrf.mxu3 }
  0xd0   : > { %v1209_v27 = vpop.eup %1208  ;;  %v781_v28 = vmul.f32 0.5, %v717_v23  ;;  %v622_v29 = vmul.f32 0.5, %v435_v25  ;;  %v623_v30 = vmul.f32 0.5, %v548_v26 }
  0xd1   : > { %v1211_v31 = vpop.eup %1210  ;;  %844 = vst [vmem:[%s1553_s6 + $0x50] sm:$0xff] %v780_v24  ;;  %v748_v32 = vadd.f32 1.0, %v1209_v27 }
  0xd2   : > { %845 = vst [vmem:[%s1553_s6 + $0x58] sm:$0xff] %v781_v28  ;;  %v749_v33 = vadd.f32 1.0, %v1211_v31  ;;  %1216 = vtanh.f32 %v622_v29 }
  0xd3   : > { %v812_v34 = vmul.f32 0.5, %v748_v32  ;;  %1218 = vtanh.f32 %v623_v30  ;;  %v390_v35 = vpop.f32.mrf.mxu0  ;;  %v503_v36 = vpop.f32.mrf.mxu1 }
  0xd4   : > { %v1213_v37 = vpop.eup %1212  ;;  %v813_v38 = vmul.f32 0.5, %v749_v33  ;;  %v592_v39 = vmul.f32 0.5, %v390_v35  ;;  %v593_v40 = vmul.f32 0.5, %v503_v36 }
  0xd5   : > { %v1215_v41 = vpop.eup %1214  ;;  %876 = vst [vmem:[%s1553_s6 + $0x150] sm:$0xff] %v812_v34  ;;  %v718_v42 = vadd.f32 1.0, %v1213_v37 }
  0xd6   : > { %877 = vst [vmem:[%s1553_s6 + $0x158] sm:$0xff] %v813_v38  ;;  %v719_v43 = vadd.f32 1.0, %v1215_v41  ;;  %1220 = vtanh.f32 %v592_v39 }
  0xd7   : > { %v782_v44 = vmul.f32 0.5, %v718_v42  ;;  %v438_v45 = vpop.f32.mrf.mxu2  ;;  %1222 = vtanh.f32 %v593_v40  ;;  %v551_v46 = vpop.f32.mrf.mxu3 }
  0xd8   : > { %v1217_v47 = vpop.eup %1216  ;;  %v783_v48 = vmul.f32 0.5, %v719_v43  ;;  %v624_v49 = vmul.f32 0.5, %v438_v45  ;;  %v625_v50 = vmul.f32 0.5, %v551_v46 }
  0xd9   : > { %v1219_v51 = vpop.eup %1218  ;;  %846 = vst [vmem:[%s1553_s6 + $0x60] sm:$0xff] %v782_v44  ;;  %v750_v52 = vadd.f32 1.0, %v1217_v47 }
  0xda   : > { %847 = vst [vmem:[%s1553_s6 + $0x68] sm:$0xff] %v783_v48  ;;  %v751_v53 = vadd.f32 1.0, %v1219_v51  ;;  %1224 = vtanh.f32 %v624_v49 }
  0xdb   : > { %v814_v54 = vmul.f32 0.5, %v750_v52  ;;  %1226 = vtanh.f32 %v625_v50  ;;  %v393_v55 = vpop.f32.mrf.mxu0  ;;  %v506_v56 = vpop.f32.mrf.mxu1 }
  0xdc   : > { %v1221_v57 = vpop.eup %1220  ;;  %v815_v58 = vmul.f32 0.5, %v751_v53  ;;  %v594_v59 = vmul.f32 0.5, %v393_v55  ;;  %v595_v60 = vmul.f32 0.5, %v506_v56 }
  0xdd   : > { %v1223_v61 = vpop.eup %1222  ;;  %878 = vst [vmem:[%s1553_s6 + $0x160] sm:$0xff] %v814_v54  ;;  %v720_v62 = vadd.f32 1.0, %v1221_v57 }
  0xde   : > { %879 = vst [vmem:[%s1553_s6 + $0x168] sm:$0xff] %v815_v58  ;;  %v721_v63 = vadd.f32 1.0, %v1223_v61  ;;  %1228 = vtanh.f32 %v594_v59 }
  0xdf   : > { %v784_v0 = vmul.f32 0.5, %v720_v62  ;;  %v441_v1 = vpop.f32.mrf.mxu2  ;;  %1230 = vtanh.f32 %v595_v60  ;;  %v554_v2 = vpop.f32.mrf.mxu3 }
  0xe0   : > { %v1225_v3 = vpop.eup %1224  ;;  %v785_v4 = vmul.f32 0.5, %v721_v63  ;;  %v626_v5 = vmul.f32 0.5, %v441_v1  ;;  %v627_v6 = vmul.f32 0.5, %v554_v2 }
  0xe1   : > { %v1227_v7 = vpop.eup %1226  ;;  %848 = vst [vmem:[%s1553_s6 + $0x70] sm:$0xff] %v784_v0  ;;  %v752_v8 = vadd.f32 1.0, %v1225_v3 }
  0xe2   : > { %849 = vst [vmem:[%s1553_s6 + $0x78] sm:$0xff] %v785_v4  ;;  %v753_v9 = vadd.f32 1.0, %v1227_v7  ;;  %1232 = vtanh.f32 %v626_v5 }
  0xe3   : > { %v816_v10 = vmul.f32 0.5, %v752_v8  ;;  %1234 = vtanh.f32 %v627_v6  ;;  %v396_v11 = vpop.f32.mrf.mxu0  ;;  %v509_v12 = vpop.f32.mrf.mxu1 }
  0xe4   : > { %v1229_v13 = vpop.eup %1228  ;;  %v817_v14 = vmul.f32 0.5, %v753_v9  ;;  %v596_v15 = vmul.f32 0.5, %v396_v11  ;;  %v597_v16 = vmul.f32 0.5, %v509_v12 }
  0xe5   : > { %v1231_v17 = vpop.eup %1230  ;;  %880 = vst [vmem:[%s1553_s6 + $0x170] sm:$0xff] %v816_v10  ;;  %v722_v18 = vadd.f32 1.0, %v1229_v13 }
  0xe6   : > { %881 = vst [vmem:[%s1553_s6 + $0x178] sm:$0xff] %v817_v14  ;;  %v723_v19 = vadd.f32 1.0, %v1231_v17  ;;  %1236 = vtanh.f32 %v596_v15 }
  0xe7   : > { %v786_v20 = vmul.f32 0.5, %v722_v18  ;;  %v444_v21 = vpop.f32.mrf.mxu2  ;;  %1238 = vtanh.f32 %v597_v16  ;;  %v557_v22 = vpop.f32.mrf.mxu3 }
  0xe8   : > { %v1233_v23 = vpop.eup %1232  ;;  %v787_v24 = vmul.f32 0.5, %v723_v19  ;;  %v628_v25 = vmul.f32 0.5, %v444_v21  ;;  %v629_v26 = vmul.f32 0.5, %v557_v22 }
  0xe9   : > { %v1235_v27 = vpop.eup %1234  ;;  %850 = vst [vmem:[%s1553_s6 + $0x80] sm:$0xff] %v786_v20  ;;  %v754_v28 = vadd.f32 1.0, %v1233_v23 }
  0xea   : > { %851 = vst [vmem:[%s1553_s6 + $0x88] sm:$0xff] %v787_v24  ;;  %v755_v29 = vadd.f32 1.0, %v1235_v27  ;;  %1240 = vtanh.f32 %v628_v25 }
  0xeb   : > { %v818_v30 = vmul.f32 0.5, %v754_v28  ;;  %1242 = vtanh.f32 %v629_v26  ;;  %v399_v31 = vpop.f32.mrf.mxu0  ;;  %v512_v32 = vpop.f32.mrf.mxu1 }
  0xec   : > { %v1237_v33 = vpop.eup %1236  ;;  %v819_v34 = vmul.f32 0.5, %v755_v29  ;;  %v598_v35 = vmul.f32 0.5, %v399_v31  ;;  %v599_v36 = vmul.f32 0.5, %v512_v32 }
  0xed   : > { %v1239_v37 = vpop.eup %1238  ;;  %882 = vst [vmem:[%s1553_s6 + $0x180] sm:$0xff] %v818_v30  ;;  %v724_v38 = vadd.f32 1.0, %v1237_v33 }
  0xee   : > { %883 = vst [vmem:[%s1553_s6 + $0x188] sm:$0xff] %v819_v34  ;;  %v725_v39 = vadd.f32 1.0, %v1239_v37  ;;  %1244 = vtanh.f32 %v598_v35 }
  0xef   : > { %v788_v40 = vmul.f32 0.5, %v724_v38  ;;  %v447_v41 = vpop.f32.mrf.mxu2  ;;  %1246 = vtanh.f32 %v599_v36  ;;  %v560_v42 = vpop.f32.mrf.mxu3 }
  0xf0   : > { %v1241_v43 = vpop.eup %1240  ;;  %v789_v44 = vmul.f32 0.5, %v725_v39  ;;  %v630_v45 = vmul.f32 0.5, %v447_v41  ;;  %v631_v46 = vmul.f32 0.5, %v560_v42 }
  0xf1   : > { %v1243_v47 = vpop.eup %1242  ;;  %852 = vst [vmem:[%s1553_s6 + $0x90] sm:$0xff] %v788_v40  ;;  %v756_v48 = vadd.f32 1.0, %v1241_v43 }
  0xf2   : > { %853 = vst [vmem:[%s1553_s6 + $0x98] sm:$0xff] %v789_v44  ;;  %v757_v49 = vadd.f32 1.0, %v1243_v47  ;;  %1248 = vtanh.f32 %v630_v45 }
  0xf3   : > { %v820_v50 = vmul.f32 0.5, %v756_v48  ;;  %1250 = vtanh.f32 %v631_v46  ;;  %v402_v51 = vpop.f32.mrf.mxu0  ;;  %v515_v52 = vpop.f32.mrf.mxu1 }
  0xf4   : > { %v1245_v53 = vpop.eup %1244  ;;  %v821_v54 = vmul.f32 0.5, %v757_v49  ;;  %v600_v55 = vmul.f32 0.5, %v402_v51  ;;  %v601_v56 = vmul.f32 0.5, %v515_v52 }
  0xf5   : > { %v1247_v57 = vpop.eup %1246  ;;  %884 = vst [vmem:[%s1553_s6 + $0x190] sm:$0xff] %v820_v50  ;;  %v726_v58 = vadd.f32 1.0, %v1245_v53 }
  0xf6   : > { %885 = vst [vmem:[%s1553_s6 + $0x198] sm:$0xff] %v821_v54  ;;  %v727_v59 = vadd.f32 1.0, %v1247_v57  ;;  %1252 = vtanh.f32 %v600_v55 }
  0xf7   : > { %v790_v60 = vmul.f32 0.5, %v726_v58  ;;  %v450_v61 = vpop.f32.mrf.mxu2  ;;  %1254 = vtanh.f32 %v601_v56  ;;  %v563_v62 = vpop.f32.mrf.mxu3 }
  0xf8   : > { %v1249_v63 = vpop.eup %1248  ;;  %v791_v0 = vmul.f32 0.5, %v727_v59  ;;  %v632_v1 = vmul.f32 0.5, %v450_v61  ;;  %v633_v2 = vmul.f32 0.5, %v563_v62 }
  0xf9   : > { %v1251_v3 = vpop.eup %1250  ;;  %854 = vst [vmem:[%s1553_s6 + $0xa0] sm:$0xff] %v790_v60  ;;  %v758_v4 = vadd.f32 1.0, %v1249_v63 }
  0xfa   : > { %855 = vst [vmem:[%s1553_s6 + $0xa8] sm:$0xff] %v791_v0  ;;  %v759_v5 = vadd.f32 1.0, %v1251_v3  ;;  %1256 = vtanh.f32 %v632_v1 }
  0xfb   : > { %v822_v6 = vmul.f32 0.5, %v758_v4  ;;  %1258 = vtanh.f32 %v633_v2  ;;  %v405_v7 = vpop.f32.mrf.mxu0  ;;  %v518_v8 = vpop.f32.mrf.mxu1 }
  0xfc   : > { %v1253_v9 = vpop.eup %1252  ;;  %v823_v10 = vmul.f32 0.5, %v759_v5  ;;  %v602_v11 = vmul.f32 0.5, %v405_v7  ;;  %v603_v12 = vmul.f32 0.5, %v518_v8 }
  0xfd   : > { %v1255_v13 = vpop.eup %1254  ;;  %886 = vst [vmem:[%s1553_s6 + $0x1a0] sm:$0xff] %v822_v6  ;;  %v728_v14 = vadd.f32 1.0, %v1253_v9 }
  0xfe   : > { %887 = vst [vmem:[%s1553_s6 + $0x1a8] sm:$0xff] %v823_v10  ;;  %v729_v15 = vadd.f32 1.0, %v1255_v13  ;;  %1260 = vtanh.f32 %v602_v11 }
  0xff   : > { %v792_v16 = vmul.f32 0.5, %v728_v14  ;;  %v453_v17 = vpop.f32.mrf.mxu2  ;;  %1262 = vtanh.f32 %v603_v12  ;;  %v566_v18 = vpop.f32.mrf.mxu3 }
 0x100   : > { %v1257_v19 = vpop.eup %1256  ;;  %v793_v20 = vmul.f32 0.5, %v729_v15  ;;  %v634_v21 = vmul.f32 0.5, %v453_v17  ;;  %v635_v22 = vmul.f32 0.5, %v566_v18 }
 0x101   : > { %v1259_v23 = vpop.eup %1258  ;;  %856 = vst [vmem:[%s1553_s6 + $0xb0] sm:$0xff] %v792_v16  ;;  %v760_v24 = vadd.f32 1.0, %v1257_v19 }
 0x102   : > { %857 = vst [vmem:[%s1553_s6 + $0xb8] sm:$0xff] %v793_v20  ;;  %v761_v25 = vadd.f32 1.0, %v1259_v23  ;;  %1264 = vtanh.f32 %v634_v21 }
 0x103   : > { %v824_v26 = vmul.f32 0.5, %v760_v24  ;;  %1266 = vtanh.f32 %v635_v22  ;;  %v408_v27 = vpop.f32.mrf.mxu0  ;;  %v521_v28 = vpop.f32.mrf.mxu1 }
 0x104   : > { %v1261_v29 = vpop.eup %1260  ;;  %v825_v30 = vmul.f32 0.5, %v761_v25  ;;  %v604_v31 = vmul.f32 0.5, %v408_v27  ;;  %v605_v32 = vmul.f32 0.5, %v521_v28 }
 0x105   : > { %v1263_v33 = vpop.eup %1262  ;;  %888 = vst [vmem:[%s1553_s6 + $0x1b0] sm:$0xff] %v824_v26  ;;  %v730_v34 = vadd.f32 1.0, %v1261_v29 }
 0x106   : > { %889 = vst [vmem:[%s1553_s6 + $0x1b8] sm:$0xff] %v825_v30  ;;  %v731_v35 = vadd.f32 1.0, %v1263_v33  ;;  %1268 = vtanh.f32 %v604_v31 }
 0x107   : > { %v794_v36 = vmul.f32 0.5, %v730_v34  ;;  %v456_v37 = vpop.f32.mrf.mxu2  ;;  %1270 = vtanh.f32 %v605_v32  ;;  %v569_v38 = vpop.f32.mrf.mxu3 }
 0x108   : > { %v1265_v39 = vpop.eup %1264  ;;  %v795_v40 = vmul.f32 0.5, %v731_v35  ;;  %v636_v41 = vmul.f32 0.5, %v456_v37  ;;  %v637_v42 = vmul.f32 0.5, %v569_v38 }
 0x109   : > { %v1267_v43 = vpop.eup %1266  ;;  %858 = vst [vmem:[%s1553_s6 + $0xc0] sm:$0xff] %v794_v36  ;;  %v762_v44 = vadd.f32 1.0, %v1265_v39 }
 0x10a   : > { %859 = vst [vmem:[%s1553_s6 + $0xc8] sm:$0xff] %v795_v40  ;;  %v763_v45 = vadd.f32 1.0, %v1267_v43  ;;  %1272 = vtanh.f32 %v636_v41 }
 0x10b   : > { %v826_v46 = vmul.f32 0.5, %v762_v44  ;;  %1274 = vtanh.f32 %v637_v42  ;;  %v411_v47 = vpop.f32.mrf.mxu0  ;;  %v524_v48 = vpop.f32.mrf.mxu1 }
 0x10c   : > { %v1269_v49 = vpop.eup %1268  ;;  %v827_v50 = vmul.f32 0.5, %v763_v45  ;;  %v606_v51 = vmul.f32 0.5, %v411_v47  ;;  %v607_v52 = vmul.f32 0.5, %v524_v48 }
 0x10d   : > { %v1271_v53 = vpop.eup %1270  ;;  %890 = vst [vmem:[%s1553_s6 + $0x1c0] sm:$0xff] %v826_v46  ;;  %v732_v54 = vadd.f32 1.0, %v1269_v49 }
 0x10e   : > { %891 = vst [vmem:[%s1553_s6 + $0x1c8] sm:$0xff] %v827_v50  ;;  %v733_v55 = vadd.f32 1.0, %v1271_v53  ;;  %1276 = vtanh.f32 %v606_v51 }
 0x10f   : > { %v796_v56 = vmul.f32 0.5, %v732_v54  ;;  %v459_v57 = vpop.f32.mrf.mxu2  ;;  %1278 = vtanh.f32 %v607_v52  ;;  %v572_v58 = vpop.f32.mrf.mxu3 }
 0x110   : > { %v1273_v59 = vpop.eup %1272  ;;  %v797_v60 = vmul.f32 0.5, %v733_v55  ;;  %v638_v61 = vmul.f32 0.5, %v459_v57  ;;  %v639_v62 = vmul.f32 0.5, %v572_v58 }
 0x111   : > { %v1275_v63 = vpop.eup %1274  ;;  %860 = vst [vmem:[%s1553_s6 + $0xd0] sm:$0xff] %v796_v56  ;;  %v764_v0 = vadd.f32 1.0, %v1273_v59 }
 0x112   : > { %861 = vst [vmem:[%s1553_s6 + $0xd8] sm:$0xff] %v797_v60  ;;  %v765_v1 = vadd.f32 1.0, %v1275_v63  ;;  %1280 = vtanh.f32 %v638_v61 }
 0x113   : > { %v828_v2 = vmul.f32 0.5, %v764_v0  ;;  %1282 = vtanh.f32 %v639_v62  ;;  %v414_v3 = vpop.f32.mrf.mxu0  ;;  %v527_v4 = vpop.f32.mrf.mxu1 }
 0x114   : > { %v1277_v5 = vpop.eup %1276  ;;  %v829_v6 = vmul.f32 0.5, %v765_v1  ;;  %v608_v7 = vmul.f32 0.5, %v414_v3  ;;  %v609_v8 = vmul.f32 0.5, %v527_v4 }
 0x115   : > { %v1279_v9 = vpop.eup %1278  ;;  %892 = vst [vmem:[%s1553_s6 + $0x1d0] sm:$0xff] %v828_v2  ;;  %v734_v10 = vadd.f32 1.0, %v1277_v5 }
 0x116   : > { %893 = vst [vmem:[%s1553_s6 + $0x1d8] sm:$0xff] %v829_v6  ;;  %v735_v11 = vadd.f32 1.0, %v1279_v9  ;;  %1284 = vtanh.f32 %v608_v7 }
 0x117   : > { %v798_v12 = vmul.f32 0.5, %v734_v10  ;;  %v462_v13 = vpop.f32.mrf.mxu2  ;;  %1286 = vtanh.f32 %v609_v8  ;;  %v575_v14 = vpop.f32.mrf.mxu3 }
 0x118   : > { %v1281_v15 = vpop.eup %1280  ;;  %v799_v16 = vmul.f32 0.5, %v735_v11  ;;  %v640_v17 = vmul.f32 0.5, %v462_v13  ;;  %v641_v18 = vmul.f32 0.5, %v575_v14 }
 0x119   : > { %v1283_v19 = vpop.eup %1282  ;;  %862 = vst [vmem:[%s1553_s6 + $0xe0] sm:$0xff] %v798_v12  ;;  %v766_v20 = vadd.f32 1.0, %v1281_v15 }
 0x11a   : > { %863 = vst [vmem:[%s1553_s6 + $0xe8] sm:$0xff] %v799_v16  ;;  %v767_v21 = vadd.f32 1.0, %v1283_v19  ;;  %1288 = vtanh.f32 %v640_v17 }
 0x11b   : > { %v830_v22 = vmul.f32 0.5, %v766_v20  ;;  %1290 = vtanh.f32 %v641_v18 }
 0x11c   : > { %v1285_v23 = vpop.eup %1284  ;;  %v831_v24 = vmul.f32 0.5, %v767_v21 }
 0x11d   : > { %v1287_v25 = vpop.eup %1286  ;;  %894 = vst [vmem:[%s1553_s6 + $0x1e0] sm:$0xff] %v830_v22  ;;  %v736_v26 = vadd.f32 1.0, %v1285_v23 }
 0x11e   : > { %895 = vst [vmem:[%s1553_s6 + $0x1e8] sm:$0xff] %v831_v24  ;;  %v737_v27 = vadd.f32 1.0, %v1287_v25 }
 0x11f   : > { %v800_v28 = vmul.f32 0.5, %v736_v26 }
 0x120   : > { %v1289_v29 = vpop.eup %1288  ;;  %v801_v30 = vmul.f32 0.5, %v737_v27 }
 0x121   : > { %v1291_v31 = vpop.eup %1290  ;;  %864 = vst [vmem:[%s1553_s6 + $0xf0] sm:$0xff] %v800_v28  ;;  %v768_v32 = vadd.f32 1.0, %v1289_v29 }
 0x122   : > { %865 = vst [vmem:[%s1553_s6 + $0xf8] sm:$0xff] %v801_v30  ;;  %v769_v33 = vadd.f32 1.0, %v1291_v31 }
 0x123   : > { %v832_v34 = vmul.f32 0.5, %v768_v32 }
 0x124   : > { %v833_v35 = vmul.f32 0.5, %v769_v33 }
 0x125   : > { %896 = vst [vmem:[%s1553_s6 + $0x1f0] sm:$0xff] %v832_v34 }
 0x126   : > { %897 = vst [vmem:[%s1553_s6 + $0x1f8] sm:$0xff] %v833_v35 }
 0x127   : > { %1319 = shalt.err (!%p1316_p5)
}
 0x128   : > { %s1372_s30 = smov 256   ;;  %s1373_s3 = smov 16  }
 0x129   : > { %1107 = dma.vmem_to_hbm [thread:$0]  (%p1429_p4), %s917_s12, 8192, %s919_s18, %s899_s20, %s1372_s30, %s1372_s30, %s1373_s3  }
 0x12a PF: > { %p1113_p6 = scmp.ge.s32.totalorder %s1370_s14, 2  ;;  %s933_s4 = sand.u32 1, %s1350_s9  }
 0x12b   : > { %s934_s5 = scalar_lea.sflag [#allocation3], %s933_s4 }
 0x12c   : > { %p1110_p7 = pnand %p1113_p6, %p1436_p8 }
 0x12e   : > { %p1111_p9 = pneg %p1110_p7 }
 0x130   : > { %1345 = dma.done.wait (%p1111_p9), %s934_s5, 8192  }
 0x131   : > { %1347 = vsyncadd (%p1111_p9), %s934_s5, 4294959104  ;;  %s15_s14 = sadd.s32 1, %s1370_s14   ;;  %s1663_s9 = smov %s1354_s10 }
 0x132   : > { %p12_p10 = scmp.ge.s32.totalorder %s15_s14, 4   ;;  %s1664_s10 = smov %s1358_s11 }
 0x133   : > { %s1665_s11 = smov %s1442_s22  ;;  %s1666_s12 = smov %s1366_s13 }
 0x134   : > { %s1667_s13 = smov %s1669_s17  ;;  %14 = sbr.rel (!%p12_p10) target bundleno = 4 (0x4), region = 66 }
 0x139   :  { %940 = vsyncpa [#allocation3], 1 }
 0x13a   :  { %942 = vsyncpa [#allocation3 + $0x1], 1 }

</bundles_post_ra>
